<compile_context>
chip_gen: v7x
topology: tpu7x:2x2x1
jax: 0.10.0
libtpu: 0.0.40
codegen_flags: <defaults>
</compile_context>

<pallas_src>
import math
import jax
import jax.numpy as jnp
from jax.experimental import pallas as pl
from jax.experimental.pallas import tpu as pltpu

_MIB = 1 << 20
_HEADROOM = 4 * _MIB          # compiler scratch / vreg spill slack


def _round_up(x, m):
    return ((x + m - 1) // m) * m


def _physical_vmem_bytes():
    """Per-core VMEM capacity; fall back to the smallest (v7x-safe) value."""
    try:
        return int(pltpu.get_tpu_info().vmem_capacity_bytes)
    except Exception:
        return 64 * _MIB


def _resident_spec(shape):
    """Constant-index_map BlockSpec; single-buffered (Buffered(1)) if supported."""
    index_map = lambda *_: (0,) * len(shape)
    try:
        return pl.BlockSpec(shape, index_map, pipeline_mode=pl.Buffered(1))
    except (AttributeError, TypeError):
        return pl.BlockSpec(shape, index_map)


# --------------------------------------------------------------------------
# Kernel: h = GELU(x @ W1 + b1); out = h @ W2 + b2   (f32 accumulation)
# --------------------------------------------------------------------------
def _embedfc_kernel(x_ref, w1_ref, b1_ref, w2_ref, b2_ref, o_ref):
    b1 = b1_ref[...].astype(jnp.float32)          # hoisted bias loads
    b2 = b2_ref[...].astype(jnp.float32)

    h = jnp.dot(x_ref[...], w1_ref[...],
                preferred_element_type=jnp.float32) + b1
    inv_sqrt2 = jnp.float32(1.0 / math.sqrt(2.0))
    h = 0.5 * h * (1.0 + jax.lax.erf(h * inv_sqrt2))   # exact erf GELU, f32

    out = jnp.dot(h.astype(w2_ref.dtype), w2_ref[...],
                  preferred_element_type=jnp.float32) + b2
    o_ref[...] = out.astype(o_ref.dtype)


# --------------------------------------------------------------------------
# Row-tile selection
# --------------------------------------------------------------------------
def _pick_tm(n, k, e, itemsize, vmem_budget, sub):
    # Resident weights are single-buffered thanks to Buffered(1).
    weights = (k * e + e * e + 2 * e) * itemsize
    # Per-row streaming cost: double-buffered x & out tiles + f32 `h` temp.
    per_row = 2 * (k + e) * itemsize + e * 4
    avail = vmem_budget - weights - _HEADROOM
    if avail < sub * per_row:
        # TODO(synk): K/N-tiled fallback (grid axis over e_pad with an f32 VMEM
        # accumulator + pl.when init/finalize) for emb_dim too large to keep
        # W2 resident; for now refuse instead of compiling an OOM config.
        raise ValueError(
            f"EmbedFC weights ({weights / _MIB:.1f} MiB) do not fit the VMEM "
            f"budget ({vmem_budget / _MIB:.1f} MiB) even at the minimum row "
            f"tile; emb_dim is too large to keep W2 resident.")

    max_tm = 2048 if vmem_budget >= 64 * _MIB else (
        1024 if vmem_budget >= 32 * _MIB else 512)
    tm = min(max_tm, avail // per_row, _round_up(max(n, 1), sub))
    if tm >= 256:
        tm = (tm // 256) * 256            # MXU-native (2x256^2) alignment
    else:
        tm = max(sub, (tm // sub) * sub)  # dtype sublane multiple

    # v7x megacore: if one tile would cover all rows but N can feed both
    # TensorCores, split into two 256-aligned tiles so grid >= 2.
    if tm >= n >= 2 * 256:
        tm = _round_up((n + 1) // 2, 256)
    return int(tm)


# --------------------------------------------------------------------------
# Parameter preparation (pad once, outside the forward pass)
# --------------------------------------------------------------------------
def prepare_embedfc_params(w1, b1, w2, b2, compute_dtype=None):
    """Pad emb_dim to a multiple of 128 (lane-dense output), reshape biases to
    2-D, and optionally cast weights to a bf16 compute dtype.  Call once."""
    emb_dim = w1.shape[1]
    e_pad = _round_up(emb_dim, 128)
    if compute_dtype is not None:
        w1 = w1.astype(compute_dtype)
        w2 = w2.astype(compute_dtype)
    if e_pad != emb_dim:
        pe = e_pad - emb_dim
        w1 = jnp.pad(w1, ((0, 0), (0, pe)))
        b1 = jnp.pad(b1, (0, pe))
        w2 = jnp.pad(w2, ((0, pe), (0, pe)))
        b2 = jnp.pad(b2, (0, pe))
    return {"w1": w1, "b1": b1.reshape(1, e_pad),
            "w2": w2, "b2": b2.reshape(1, e_pad),
            "emb_dim": emb_dim}


# --------------------------------------------------------------------------
# Forward wrapper
# --------------------------------------------------------------------------
def embed_fc(x, params, input_dim, *, tm=None):
    """Pallas equivalent of EmbedFC.forward.

    x      : any shape whose elements flatten to (-1, input_dim)
    params : dict from prepare_embedfc_params
    """
    w1, b1, w2, b2 = params["w1"], params["b1"], params["w2"], params["b2"]
    emb_dim = params["emb_dim"]
    e_pad = w1.shape[1]

    x2 = x.reshape(-1, input_dim)                 # glue: view(-1, input_dim)
    if x2.dtype != w1.dtype:
        x2 = x2.astype(w1.dtype)                  # optional bf16 compute mode
    n = x2.shape[0]
    itemsize = jnp.dtype(x2.dtype).itemsize
    sub = max(8, 32 // itemsize)                  # 8 f32 / 16 bf16 / 32 int8

    # ---- generation-aware VMEM budget ------------------------------------
    vmem_phys = _physical_vmem_bytes()            # 128 MiB v5e/v6e, 64 MiB v7x
    vmem_budget = (vmem_phys * 3) // 4            # ~96 MiB v5e/v6e, ~48 MiB v7x

    # ---- pick row tile and pad N so TM divides it exactly -----------------
    if tm is None:
        tm = _pick_tm(n, input_dim, e_pad, itemsize, vmem_budget, sub)
    else:
        tm = max(sub, _round_up(tm, sub))
    n_pad = _round_up(max(n, 1), tm)
    if n_pad != n:
        x2 = jnp.pad(x2, ((0, n_pad - n), (0, 0)))
    grid = (n_pad // tm,)

    # ---- scoped VMEM limit matched to the actual footprint ----------------
    w_item = jnp.dtype(w1.dtype).itemsize
    b_item = jnp.dtype(b1.dtype).itemsize
    weights_bytes = (w1.size + w2.size) * w_item + (b1.size + b2.size) * b_item
    req_vmem = (weights_bytes                              # single-buffered
                + 2 * tm * (input_dim + e_pad) * itemsize  # x/out double-buffered
                + tm * e_pad * 4                           # f32 h temporary
                + _HEADROOM)
    vmem_limit = int(min(vmem_phys, max(req_vmem, 32 * _MIB)))

    cost = pl.CostEstimate(
        flops=2 * n_pad * input_dim * e_pad + 2 * n_pad * e_pad * e_pad,
        transcendentals=n_pad * e_pad,
        bytes_accessed=(x2.size * itemsize + weights_bytes
                        + n_pad * e_pad * itemsize),
    )

    out = pl.pallas_call(
        _embedfc_kernel,
        out_shape=jax.ShapeDtypeStruct((n_pad, e_pad), x2.dtype),
        grid_spec=pltpu.PrefetchScalarGridSpec(
            num_scalar_prefetch=0,
            grid=grid,
            in_specs=[
                pl.BlockSpec((tm, input_dim), lambda i: (i, 0)),  # streamed
                _resident_spec((input_dim, e_pad)),               # W1 resident
                _resident_spec((1, e_pad)),                       # b1 resident
                _resident_spec((e_pad, e_pad)),                   # W2 resident
                _resident_spec((1, e_pad)),                       # b2 resident
            ],
            out_specs=pl.BlockSpec((tm, e_pad), lambda i: (i, 0)),  # streamed
        ),
        compiler_params=pltpu.CompilerParams(
            dimension_semantics=("parallel",),
            vmem_limit_bytes=vmem_limit),
        cost_estimate=cost,
    )(x2, w1, b1, w2, b2)

    return out[:n, :emb_dim]


# --------------------------------------------------------------------------
# Init + reference + self-test
# --------------------------------------------------------------------------
def init_embedfc_params(key, input_dim, emb_dim, dtype=jnp.float32):
    """Deterministic init mirroring nn.Linear default (uniform +-1/sqrt(fan_in))."""
    k1, k2, k3, k4 = jax.random.split(key, 4)
    bound1 = 1.0 / math.sqrt(input_dim)
    bound2 = 1.0 / math.sqrt(emb_dim)
    w1 = jax.random.uniform(k1, (input_dim, emb_dim), dtype, -bound1, bound1)
    b1 = jax.random.uniform(k2, (emb_dim,), dtype, -bound1, bound1)
    w2 = jax.random.uniform(k3, (emb_dim, emb_dim), dtype, -bound2, bound2)
    b2 = jax.random.uniform(k4, (emb_dim,), dtype, -bound2, bound2)
    return w1, b1, w2, b2


def _reference(x, w1, b1, w2, b2, input_dim):
    x2 = x.reshape(-1, input_dim)
    h = x2 @ w1 + b1
    h = 0.5 * h * (1.0 + jax.lax.erf(h / jnp.sqrt(2.0)))
    return h @ w2 + b2


if __name__ == "__main__":
    input_dim = 16
    emb_dim = 32

    key = jax.random.PRNGKey(0)
    kx, kp, kx2 = jax.random.split(key, 3)
    w1, b1, w2, b2 = init_embedfc_params(kp, input_dim, emb_dim)
    params = prepare_embedfc_params(w1, b1, w2, b2)   # pad once, not per call

    # Case 1: tiny module-shaped input (2, 4, 4) -> view(-1, 16) -> (2, 16)
    x = jax.random.normal(kx, (2, 4, 4), dtype=jnp.float32)
    out = jax.block_until_ready(embed_fc(x, params, input_dim))
    ref = _reference(x, w1, b1, w2, b2, input_dim)
    assert out.shape == (2, emb_dim)
    assert jnp.allclose(out, ref, atol=1e-5, rtol=1e-5)

    # Case 2: non-multiple-of-TM row count to exercise row tiling (grid > 1)
    # and the padding/slicing path.
    x_big = jax.random.normal(kx2, (37, input_dim), dtype=jnp.float32)
    out_big = jax.block_until_ready(
        embed_fc(x_big, params, input_dim, tm=16))
    ref_big = _reference(x_big, w1, b1, w2, b2, input_dim)
    assert out_big.shape == (37, emb_dim)
    assert jnp.allclose(out_big, ref_big, atol=1e-5, rtol=1e-5)

    print("KERNEL_OK")
</pallas_src>

<mosaic_0001>
module attributes {stable_mosaic.version = 11 : i64} {
  func.func @_embedfc_kernel(%arg0: i32, %arg1: memref<8x16xf32, #tpu.memory_space<vmem>>, %arg2: memref<16x128xf32, #tpu.memory_space<vmem>>, %arg3: memref<1x128xf32, #tpu.memory_space<vmem>>, %arg4: memref<128x128xf32, #tpu.memory_space<vmem>>, %arg5: memref<1x128xf32, #tpu.memory_space<vmem>>, %arg6: memref<8x128xf32, #tpu.memory_space<vmem>>) attributes {dimension_semantics = [#tpu.dimension_semantics<parallel>], iteration_bounds = array<i64: 1>, scalar_prefetch = 0 : i64, scratch_operands = 0 : i64, tpu.core_type = #tpu.core_type<tc>, window_params = [{transform_indices = @transform_0, window_bounds = array<i64: 8, 16>}, {pipeline_mode = #tpu.pipeline_mode<synchronous>, transform_indices = @transform_1, window_bounds = array<i64: 16, 128>}, {pipeline_mode = #tpu.pipeline_mode<synchronous>, transform_indices = @transform_2, window_bounds = array<i64: 1, 128>}, {pipeline_mode = #tpu.pipeline_mode<synchronous>, transform_indices = @transform_3, window_bounds = array<i64: 128, 128>}, {pipeline_mode = #tpu.pipeline_mode<synchronous>, transform_indices = @transform_4, window_bounds = array<i64: 1, 128>}, {transform_indices = @transform_5, window_bounds = array<i64: 8, 128>}]} {
    %c0 = arith.constant 0 : index
    %c0_0 = arith.constant 0 : index
    %0 = vector.load %arg3[%c0, %c0_0] : memref<1x128xf32, #tpu.memory_space<vmem>>, vector<1x128xf32>
    %c0_1 = arith.constant 0 : index
    %c0_2 = arith.constant 0 : index
    %1 = vector.load %arg5[%c0_1, %c0_2] : memref<1x128xf32, #tpu.memory_space<vmem>>, vector<1x128xf32>
    %c0_3 = arith.constant 0 : index
    %c0_4 = arith.constant 0 : index
    %2 = vector.load %arg1[%c0_3, %c0_4] : memref<8x16xf32, #tpu.memory_space<vmem>>, vector<8x16xf32>
    %c0_5 = arith.constant 0 : index
    %c0_6 = arith.constant 0 : index
    %3 = vector.load %arg2[%c0_5, %c0_6] : memref<16x128xf32, #tpu.memory_space<vmem>>, vector<16x128xf32>
    %cst = arith.constant dense<0.000000e+00> : vector<8x128xf32>
    %4 = tpu.matmul %2, %3, %cst {dimension_numbers = #tpu.dot_dimension_numbers<[1], [0], [0], [1], [0, 0, 1, 1], [], []>} : vector<8x16xf32>, vector<16x128xf32>, vector<8x128xf32> -> vector<8x128xf32>
    %5 = vector.broadcast %0 : vector<1x128xf32> to vector<8x128xf32>
    %6 = arith.addf %4, %5 : vector<8x128xf32>
    %cst_7 = arith.constant 5.000000e-01 : f32
    %7 = vector.broadcast %cst_7 : f32 to vector<8x128xf32>
    %8 = arith.mulf %7, %6 : vector<8x128xf32>
    %cst_8 = arith.constant 0.707106769 : f32
    %9 = vector.broadcast %cst_8 : f32 to vector<8x128xf32>
    %10 = arith.mulf %6, %9 : vector<8x128xf32>
    %11 = math.erf %10 : vector<8x128xf32>
    %cst_9 = arith.constant 1.000000e+00 : f32
    %12 = vector.broadcast %cst_9 : f32 to vector<8x128xf32>
    %13 = arith.addf %12, %11 : vector<8x128xf32>
    %14 = arith.mulf %8, %13 : vector<8x128xf32>
    %c0_10 = arith.constant 0 : index
    %c0_11 = arith.constant 0 : index
    %15 = vector.load %arg4[%c0_10, %c0_11] : memref<128x128xf32, #tpu.memory_space<vmem>>, vector<128x128xf32>
    %cst_12 = arith.constant dense<0.000000e+00> : vector<8x128xf32>
    %16 = tpu.matmul %14, %15, %cst_12 {dimension_numbers = #tpu.dot_dimension_numbers<[1], [0], [0], [1], [0, 0, 1, 1], [], []>} : vector<8x128xf32>, vector<128x128xf32>, vector<8x128xf32> -> vector<8x128xf32>
    %17 = vector.broadcast %1 : vector<1x128xf32> to vector<8x128xf32>
    %18 = arith.addf %16, %17 : vector<8x128xf32>
    %c0_13 = arith.constant 0 : index
    %c0_14 = arith.constant 0 : index
    %19 = vector.load %arg6[%c0_13, %c0_14] : memref<8x128xf32, #tpu.memory_space<vmem>>, vector<8x128xf32>
    tpu.vector_store %arg6[%c0_13, %c0_14], %18 {strides = array<i32>} : memref<8x128xf32, #tpu.memory_space<vmem>>, vector<8x128xf32>,
    return
  }
  func.func @transform_0(%arg0: i32) -> (i32, i32) {
    %c0_i32 = arith.constant 0 : i32
    %c0_i32_0 = arith.constant 0 : i32
    return %arg0, %c0_i32 : i32, i32
  }
  func.func @transform_1(%arg0: i32) -> (i32, i32) {
    %c0_i32 = arith.constant 0 : i32
    %c0_i32_0 = arith.constant 0 : i32
    %c0_i32_1 = arith.constant 0 : i32
    return %c0_i32, %c0_i32_0 : i32, i32
  }
  func.func @transform_2(%arg0: i32) -> (i32, i32) {
    %c0_i32 = arith.constant 0 : i32
    %c0_i32_0 = arith.constant 0 : i32
    %c0_i32_1 = arith.constant 0 : i32
    return %c0_i32, %c0_i32_0 : i32, i32
  }
  func.func @transform_3(%arg0: i32) -> (i32, i32) {
    %c0_i32 = arith.constant 0 : i32
    %c0_i32_0 = arith.constant 0 : i32
    %c0_i32_1 = arith.constant 0 : i32
    return %c0_i32, %c0_i32_0 : i32, i32
  }
  func.func @transform_4(%arg0: i32) -> (i32, i32) {
    %c0_i32 = arith.constant 0 : i32
    %c0_i32_0 = arith.constant 0 : i32
    %c0_i32_1 = arith.constant 0 : i32
    return %c0_i32, %c0_i32_0 : i32, i32
  }
  func.func @transform_5(%arg0: i32) -> (i32, i32) {
    %c0_i32 = arith.constant 0 : i32
    %c0_i32_0 = arith.constant 0 : i32
    return %arg0, %c0_i32 : i32, i32
  }
}

</mosaic_0001>

<bundles_post_ra>
// kernel: tpu_custom_call.1
= control target key start
LH: loop header
LB: loop body
LE: loop exit
PB: predicated region body
PF: predicated region fallthrough
CT: control target
= control target key end

     0   :  { %10 = vsyncpa [#allocation3], 0  ;;  %s555_s0 = inlined_call_operand.hbm [shape: f32[8,16], index: 0, kind: input, shape index: {}]   ;;  %s556_s1 = inlined_call_operand.hbm [shape: f32[16,128], index: 1, kind: input, shape index: {}]   ;;  %s557_s2 = inlined_call_operand.vmem [shape: f32[1,128], index: 2, kind: input, shape index: {}]   ;;  %s558_s3 = inlined_call_operand.hbm [shape: f32[128,128], index: 3, kind: input, shape index: {}]   ;;  %s559_s4 = inlined_call_operand.vmem [shape: f32[1,128], index: 4, kind: input, shape index: {}]   ;;  %s560_s5 = inlined_call_operand.hbm [shape: f32[8,128], index: 5, kind: output, shape index: {}]  }
   0x1   :  { %11 = vsyncpa [#allocation6], 0 }
   0x2   :  { %12 = vsyncpa [#allocation4], 0  ;;  %s456_s18 = smov [#allocation5]   ;;  %s362_s22 = scalar_lea.hbm %s556_s1, 256 }
   0x3   :  { %s28_s19 = sshll.u32 %s456_s18, 4  ;;  %p363_p0 = scmp.ne.s32.totalorder %s556_s1, %s362_s22  ;;  %s29_s19 = int_to_ptr.vmem [resolvable:$true] %s28_s19 }
   0x4   :  { %p366_p1 = scmp.lt.u32.totalorder %s362_s22, %s556_s1 }
   0x6   :  { %p368_p2 = pnand %p366_p1, %p363_p0 }
   0x8   :  { %371 = shalt.err (!%p368_p2)
}
   0x9   :  { %s372_s27 = scalar_lea.vmem %s29_s19, 256  ;;  %p377_p4 = scmp.lt.s32.totalorder %s29_s19, %s29_s19 }
   0xa   :  { %p373_p3 = scmp.ne.s32.totalorder %s29_s19, %s372_s27  ;;  %p378_p5 = scmp.lt.s32.totalorder %s372_s27, %s372_s27 }
   0xc   :  { %p379_p6 = por %p378_p5, %p377_p4 }
   0xe   :  { %p380_p7 = pnand %p379_p6, %p373_p3 }
  0x10   :  { %383 = shalt.err (!%p380_p7)
}
  0x11   :  { %s457_s28 = smov 128   ;;  %s458_s29 = smov 8  }
  0x12   :  { %34 = dma.hbm_to_vmem [thread:$0]  %s556_s1, 256, %s29_s19, [#allocation6], %s457_s28, %s457_s28, %s458_s29  }
  0x13   :  { %s459_s7 = smov [#allocation2]   ;;  %s460_s9 = smov [#allocation7]  }
  0x14   :  { %s19_s8 = sshll.u32 %s459_s7, 4  ;;  %s42_s10 = sshll.u32 %s460_s9, 4  ;;  %s20_s8 = int_to_ptr.vmem [resolvable:$true] %s19_s8  ;;  %s43_s10 = int_to_ptr.vmem [resolvable:$true] %s42_s10 }
  0x15   :  { %s384_s13 = scalar_lea.hbm %s555_s0, 128 }
  0x16   :  { %p385_p8 = scmp.ne.s32.totalorder %s555_s0, %s384_s13  ;;  %p388_p9 = scmp.lt.u32.totalorder %s384_s13, %s555_s0 }
  0x18   :  { %p390_p10 = pnand %p388_p9, %p385_p8 }
  0x1a   :  { %393 = shalt.err (!%p390_p10)
}
  0x1b   :  { %s394_s1 = scalar_lea.vmem %s20_s8, 128  ;;  %p399_p12 = scmp.lt.s32.totalorder %s20_s8, %s20_s8 }
  0x1c   :  { %p395_p11 = scmp.ne.s32.totalorder %s20_s8, %s394_s1  ;;  %p400_p13 = scmp.lt.s32.totalorder %s394_s1, %s394_s1 }
  0x1e   :  { %p401_p0 = por %p400_p13, %p399_p12 }
  0x20   :  { %p402_p1 = pnand %p401_p0, %p395_p11 }
  0x22   :  { %405 = shalt.err (!%p402_p1)
}
  0x23   :  { %22 = dma.hbm_to_vmem [thread:$0]  %s555_s0, 128, %s20_s8, [#allocation3]  }
  0x24   :  { %s406_s22 = scalar_lea.hbm %s558_s3, 2048 }
  0x25   :  { %p407_p2 = scmp.ne.s32.totalorder %s558_s3, %s406_s22  ;;  %p410_p3 = scmp.lt.u32.totalorder %s406_s22, %s558_s3 }
  0x27   :  { %p412_p4 = pnand %p410_p3, %p407_p2 }
  0x29   :  { %415 = shalt.err (!%p412_p4)
}
  0x2a   :  { %s416_s27 = scalar_lea.vmem %s43_s10, 2048  ;;  %p421_p6 = scmp.lt.s32.totalorder %s43_s10, %s43_s10 }
  0x2b   :  { %p417_p5 = scmp.ne.s32.totalorder %s43_s10, %s416_s27  ;;  %p422_p7 = scmp.lt.s32.totalorder %s416_s27, %s416_s27 }
  0x2d   :  { %p423_p8 = por %p422_p7, %p421_p6 }
  0x2f   :  { %p424_p9 = pnand %p423_p8, %p417_p5 }
  0x31   :  { %427 = shalt.err (!%p424_p9)
}
  0x32   :  { %48 = dma.hbm_to_vmem [thread:$0]  %s558_s3, 2048, %s43_s10, [#allocation6], %s457_s28, %s457_s28, %s458_s29  }
  0x33   :  { %450 = dma.done.wait [#allocation3], 128  }
  0x34   :  { %451 = vsyncadd [#allocation3], 4294967168 }
  0x35   :  { %452 = dma.done.wait [#allocation6], 2304  }
  0x36   :  { %453 = vsyncadd [#allocation6], 4294964992  ;;  %v461_v0 = vmov 0.0|0.0   ;;  %vm462_vm0 = vmmov 0   ;;  %v463_v1 = vmov 0.0   ;;  %v63_v2 = vld [vmem:[#allocation5] sm:$0xff] }
  0x37   :  { %324 = vmatprep.subr.bf16.mxu0 %v461_v0  ;;  %286 = vmatprep.mubr.msk.f32.mxu0 %vm462_vm0, %v463_v1  ;;  %v64_v3 = vld [vmem:[#allocation5 + $0x8] sm:$0xff]  ;;  %v150_v5 = vld [vmem:[#allocation7] sm:$0xff]  ;;  %v151_v6 = vld [vmem:[#allocation7 + $0x8] sm:$0xff]  ;;  %vm71_vm1 = vcmask 130048   ;;  %s464_s7 = smov [#allocation8]  }
  0x38   :  { %327 = vmatprep.subr.bf16.mxu1 %v461_v0  ;;  %321 = vmatprep.mubr.msk.f32.mxu1 %vm462_vm0, %v463_v1  ;;  %v325_v4 = vpack.c.bf16 %v64_v3, %v63_v2  ;;  %v152_v7 = vld [vmem:[#allocation7 + $0x10] sm:$0xff]  ;;  %v328_v8 = vpack.c.bf16 %v151_v6, %v150_v5  ;;  %v153_v9 = vld [vmem:[#allocation7 + $0x18] sm:$0xff]  ;;  %v62_v10 = vld [vmem:[#allocation2] sm:$0xff]  ;;  %s249_s8 = sshll.u32 %s464_s7, 4  ;;  %s250_s8 = int_to_ptr.vmem [resolvable:$true] %s249_s8 }
  0x39   :  { %v331_v11 = vpack.c.bf16 %v153_v9, %v152_v7  ;;  %v154_v12 = vld [vmem:[#allocation7 + $0x20] sm:$0xff]  ;;  %v155_v13 = vld [vmem:[#allocation7 + $0x28] sm:$0xff]  ;;  %v156_v15 = vld [vmem:[#allocation7 + $0x30] sm:$0xff]  ;;  %p433_p11 = scmp.lt.s32.totalorder %s250_s8, %s250_s8 }
  0x3a   :  { %326 = vmatpush3.bf16.msra.mxu0 %v325_v4  ;;  %329 = vmatpush3.bf16.msra.mxu1 %v328_v8  ;;  %v334_v14 = vpack.c.bf16 %v155_v13, %v154_v12  ;;  %v157_v16 = vld [vmem:[#allocation7 + $0x38] sm:$0xff]  ;;  %v158_v18 = vld [vmem:[#allocation7 + $0x40] sm:$0xff]  ;;  %v159_v19 = vld [vmem:[#allocation7 + $0x48] sm:$0xff] }
  0x3b   :  { %330 = vmatprep.subr.bf16.mxu1 %v461_v0  ;;  %v337_v17 = vpack.c.bf16 %v157_v16, %v156_v15  ;;  %v340_v20 = vpack.c.bf16 %v159_v19, %v158_v18  ;;  %v160_v21 = vld [vmem:[#allocation7 + $0x50] sm:$0xff]  ;;  %v161_v22 = vld [vmem:[#allocation7 + $0x58] sm:$0xff]  ;;  %v162_v24 = vld [vmem:[#allocation7 + $0x60] sm:$0xff] }
  0x3c   :  { %v343_v23 = vpack.c.bf16 %v161_v22, %v160_v21  ;;  %v163_v25 = vld [vmem:[#allocation7 + $0x68] sm:$0xff]  ;;  %v164_v27 = vld [vmem:[#allocation7 + $0x70] sm:$0xff]  ;;  %v165_v28 = vld [vmem:[#allocation7 + $0x78] sm:$0xff] }
  0x3d   :  { %287 = vmatmul.mubr.msk.f32.vlgmr.msra.gmra.mrb[0].mxu0 %vm71_vm1, %v62_v10  ;;  %v346_v26 = vpack.c.bf16 %v163_v25, %v162_v24  ;;  %v349_v29 = vpack.c.bf16 %v165_v28, %v164_v27  ;;  %v259_v30 = vld [vmem:[%s557_s2] ss:$0 sm:$0xff]  ;;  %s428_s2 = scalar_lea.vmem %s250_s8, 128 }
  0x3e   :  { %332 = vmatpush3.bf16.msra.mxu1 %v331_v11  ;;  %v261_v39 = vld [vmem:[%s559_s4] ss:$0 sm:$0xff]  ;;  %p429_p10 = scmp.ne.s32.totalorder %s250_s8, %s428_s2  ;;  %p434_p12 = scmp.lt.s32.totalorder %s428_s2, %s428_s2 }
  0x3f   :  { %333 = vmatprep.subr.bf16.mxu1 %v461_v0 }
  0x40   :  { %p435_p13 = por %p434_p12, %p433_p11 }
  0x42   :  { %335 = vmatpush3.bf16.msra.mxu1 %v334_v14  ;;  %p436_p0 = pnand %p435_p13, %p429_p10 }
  0x43   :  { %336 = vmatprep.subr.bf16.mxu1 %v461_v0 }
  0x46   :  { %338 = vmatpush3.bf16.msra.mxu1 %v337_v17 }
  0x47   :  { %339 = vmatprep.subr.bf16.mxu1 %v461_v0 }
  0x4a   :  { %341 = vmatpush3.bf16.msra.mxu1 %v340_v20 }
  0x4b   :  { %342 = vmatprep.subr.bf16.mxu1 %v461_v0 }
  0x4e   :  { %344 = vmatpush3.bf16.msra.mxu1 %v343_v23 }
  0x4f   :  { %345 = vmatprep.subr.bf16.mxu1 %v461_v0 }
  0x52   :  { %347 = vmatpush3.bf16.msra.mxu1 %v346_v26 }
  0x53   :  { %348 = vmatprep.subr.bf16.mxu1 %v461_v0 }
  0x56   :  { %350 = vmatpush3.bf16.msra.mxu1 %v349_v29 }
 0x110   :  { %v141_v31 = vpop.f32.mrb[0].mxu0 }
 0x111   :  { %v142_v32 = vadd.f32 %v259_v30, %v141_v31  ;;  %v288_v33 = vpop.f32.mrb[1].mxu0 }
 0x113   :  { %v146_v34 = vmul.f32 0.70710677, %v142_v32  ;;  %v145_v36 = vmul.f32 0.5, %v142_v32 }
 0x115   :  { %360 = verf.f32 %v146_v34 }
 0x11f   :  { %v361_v35 = vpop.eup %360 }
 0x120   :  { %v148_v37 = vadd.f32 1.0, %v361_v35 }
 0x122   :  { %v149_v38 = vmul.f32 %v148_v37, %v145_v36 }
 0x124   :  { %322 = vmatmul.mubr.f32.vlgmr.msra.gmra.mrb[0].mxu1 %v149_v38 }
 0x1f7   :  { %v238_v40 = vpop.f32.mrb[0].mxu1 }
 0x1f8   :  { %v239_v41 = vadd.f32 %v261_v39, %v238_v40  ;;  %v323_v42 = vpop.f32.mrb[1].mxu1 }
 0x1fa   :  { %242 = vst [vmem:[#allocation8] sm:$0xff] %v239_v41 }
 0x1fb   :  { %439 = shalt.err (!%p436_p0)
}
 0x1fc   :  { %s440_s11 = scalar_lea.hbm %s560_s5, 128 }
 0x1fd   :  { %p441_p1 = scmp.ne.s32.totalorder %s560_s5, %s440_s11  ;;  %p444_p2 = scmp.lt.u32.totalorder %s440_s11, %s560_s5 }
 0x1ff   :  { %p446_p3 = pnand %p444_p2, %p441_p1 }
 0x201   :  { %449 = shalt.err (!%p446_p3)
}
 0x202   :  { %252 = dma.vmem_to_hbm [thread:$0]  %s250_s8, 128, %s560_s5, [#allocation4]  }
 0x203   :  { %454 = dma.done.wait [#allocation4], 128  }
 0x204   :  { %455 = vsyncadd [#allocation4], 4294967168 }
 0x205   :  { %256 = vsyncpa [#allocation3], 1 }
 0x206   :  { %257 = vsyncpa [#allocation6], 1 }
 0x207   :  { %258 = vsyncpa [#allocation4], 1 }

</bundles_post_ra>
